<compile_context>
chip_gen: v6e
topology: v6e:2x2x1
jax: 0.10.0
libtpu: 0.0.40
codegen_flags: <defaults>
</compile_context>

<pallas_src>
import numpy as np

import jax
import jax.numpy as jnp
from jax.experimental import pallas as pl
from jax.experimental.pallas import tpu as pltpu


# -----------------------------------------------------------------------------
# Positional-encoding table (host-side buffer setup, vectorized numpy).
# -----------------------------------------------------------------------------
def build_pe_table(max_len: int, d_model: int) -> jnp.ndarray:
    """Vectorized version of the exact PyTorch __init__ loop (d_model even)."""
    pos = np.arange(max_len, dtype=np.float64)[:, None]            # (max_len, 1)
    i = np.arange(0, d_model, 2, dtype=np.float64)[None, :]        # (1, d_model/2)
    pe = np.zeros((max_len, d_model), dtype=np.float32)
    pe[:, 0::2] = np.sin(pos / 10000.0 ** (2.0 * i / d_model))
    pe[:, 1::2] = np.cos(pos / 10000.0 ** (2.0 * (i + 1.0) / d_model))
    # shape (1, 1, max_len, d_model) like pe.unsqueeze(0).unsqueeze(0)
    return jnp.asarray(pe)[None, None, :, :]


# -----------------------------------------------------------------------------
# Pallas kernels (pure elementwise, memory-bound).
# -----------------------------------------------------------------------------
def _add_pe_kernel(x_ref, pe_ref, o_ref):
    # x_ref/o_ref: (TM, T*F) VMEM block; pe_ref: (1, T*F), broadcast over rows.
    o_ref[...] = x_ref[...] + pe_ref[...]


def _add_pe_dropout_kernel(x_ref, pe_ref, m_ref, o_ref):
    # m_ref holds the inverted-dropout mask (0 or 1/keep_prob), same block as x.
    o_ref[...] = (x_ref[...] + pe_ref[...]) * m_ref[...]


# -----------------------------------------------------------------------------
# Module wrapper.
# -----------------------------------------------------------------------------
class TemporalPositionalEncoding:
    def __init__(self, d_model, dropout, max_len, lookup_index=None):
        self.p = float(dropout)
        self.lookup_index = lookup_index
        self.max_len = max_len
        self.d_model = d_model
        self.pe = build_pe_table(max_len, d_model)   # (1, 1, max_len, d_model)

    def __call__(self, x, t=None, *, training=False, seed=0):
        """x: (B, N, T, F) float32 -> (B, N, T, F) float32."""
        B, N, T, F = x.shape
        assert F == self.d_model

        # pe selection (glue, matches pe[:, :, lookup_index, :] / pe[:, :, :T, :]).
        if self.lookup_index is not None:
            pe_sel = self.pe[0, 0, jnp.asarray(self.lookup_index), :]
        else:
            pe_sel = self.pe[0, 0, :T, :]
        assert pe_sel.shape[0] == T, "selected pe length must match x's time dim"

        # ---- flatten to a single lane-dense 2-D problem -----------------------
        R = B * N                     # rows (each row = one full (T, F) slab)
        TF = T * F                    # lane-dense last dim (full-extent block)
        x2 = x.reshape(R, TF)
        pe2 = pe_sel.reshape(1, TF)

        # ---- row tile: biggest ~4 MiB block that fits, multiple of 8 ----------
        row_bytes = TF * 4
        target_block_bytes = 4 * 1024 * 1024
        tm = max(1, target_block_bytes // row_bytes)
        if tm >= R:
            tm = R                                     # full extent is always legal
        else:
            tm = min(R, max(8, (tm // 8) * 8))         # sublane-aligned tile
        num_blocks = pl.cdiv(R, tm)

        # ---- VMEM budget: 2 bufs x (x + mask + out) + pe, with headroom -------
        block_bytes = tm * row_bytes
        vmem_limit = int(min(max(2 * 3 * block_bytes + TF * 4 + (4 << 20),
                                 16 << 20),
                             48 << 20))                # stays under v7x's 64 MiB

        cparams = pltpu.CompilerParams(
            dimension_semantics=("parallel",),         # megacore-shardable axis
            vmem_limit_bytes=vmem_limit,
        )

        x_spec = pl.BlockSpec((tm, TF), lambda r: (r, 0))
        pe_spec = pl.BlockSpec((1, TF), lambda r: (0, 0))
        out_spec = pl.BlockSpec((tm, TF), lambda r: (r, 0))
        out_shape = jax.ShapeDtypeStruct((R, TF), x.dtype)

        if (not training) or self.p == 0.0:
            # Eval mode: dropout is identity (x.detach() is a no-op in forward math).
            out2 = pl.pallas_call(
                _add_pe_kernel,
                out_shape=out_shape,
                grid=(num_blocks,),
                in_specs=[x_spec, pe_spec],
                out_specs=out_spec,
                compiler_params=cparams,
                input_output_aliases={0: 0},           # reuse x2's HBM buffer
            )(x2, pe2)
            return out2.reshape(B, N, T, F)

        # Training mode: inverted dropout via a precomputed mask, fused in-kernel.
        keep_prob = 1.0 - self.p
        if keep_prob <= 0.0:
            mask2 = jnp.zeros((R, TF), dtype=jnp.float32)          # p == 1.0 guard
        else:
            key = jax.random.PRNGKey(seed)
            keep = jax.random.bernoulli(key, keep_prob, (R, TF))
            mask2 = keep.astype(jnp.float32) * jnp.float32(1.0 / keep_prob)

        out2 = pl.pallas_call(
            _add_pe_dropout_kernel,
            out_shape=out_shape,
            grid=(num_blocks,),
            in_specs=[x_spec, pe_spec, x_spec],        # mask tiled like x
            out_specs=out_spec,
            compiler_params=cparams,
            input_output_aliases={0: 0},
        )(x2, pe2, mask2)
        return out2.reshape(B, N, T, F)


# -----------------------------------------------------------------------------
# Demo / self-test.
# -----------------------------------------------------------------------------
if __name__ == "__main__":
    B, N, T, F = 2, 4, 8, 32   # (batch, nodes, time, d_model)
    max_len = 16
    dropout_p = 0.1

    key = jax.random.PRNGKey(0)
    x = jax.random.normal(key, (B, N, T, F), dtype=jnp.float32)
    t = jnp.arange(T)  # unused by forward, kept for signature parity

    module = TemporalPositionalEncoding(d_model=F, dropout=dropout_p, max_len=max_len)

    # Eval-mode forward (deterministic; dropout is identity in eval).
    out = jax.block_until_ready(module(x, t, training=False))
    ref = x + module.pe[:, :, :T, :]
    assert out.shape == (B, N, T, F)
    assert jnp.allclose(out, ref, atol=1e-6), "eval-mode mismatch vs reference"

    # Training path: every element is either dropped (0) or scaled by 1/keep_prob.
    out_tr = jax.block_until_ready(module(x, t, training=True, seed=123))
    assert out_tr.shape == (B, N, T, F)
    keep_prob = 1.0 - dropout_p
    ok = jnp.isclose(out_tr, 0.0, atol=1e-6) | jnp.isclose(
        out_tr, ref / keep_prob, atol=1e-5, rtol=1e-5)
    assert bool(jnp.all(ok)), "training-mode dropout values out of spec"

    print("KERNEL_OK")
</pallas_src>

<mosaic_0001>
module attributes {stable_mosaic.version = 11 : i64} {
  func.func @_add_pe_kernel(%arg0: i32, %arg1: memref<8x256xf32, #tpu.memory_space<vmem>>, %arg2: memref<1x256xf32, #tpu.memory_space<vmem>>, %arg3: memref<8x256xf32, #tpu.memory_space<vmem>>) attributes {dimension_semantics = [#tpu.dimension_semantics<parallel>], iteration_bounds = array<i64: 1>, scalar_prefetch = 0 : i64, scratch_operands = 0 : i64, tpu.core_type = #tpu.core_type<tc>, window_params = [{transform_indices = @transform_0, window_bounds = array<i64: 8, 256>}, {pipeline_mode = #tpu.pipeline_mode<synchronous>, transform_indices = @transform_1, window_bounds = array<i64: 1, 256>}, {transform_indices = @transform_2, window_bounds = array<i64: 8, 256>}]} {
    %c0 = arith.constant 0 : index
    %c0_0 = arith.constant 0 : index
    %0 = vector.load %arg1[%c0, %c0_0] : memref<8x256xf32, #tpu.memory_space<vmem>>, vector<8x256xf32>
    %c0_1 = arith.constant 0 : index
    %c0_2 = arith.constant 0 : index
    %1 = vector.load %arg2[%c0_1, %c0_2] : memref<1x256xf32, #tpu.memory_space<vmem>>, vector<1x256xf32>
    %2 = vector.broadcast %1 : vector<1x256xf32> to vector<8x256xf32>
    %3 = arith.addf %0, %2 : vector<8x256xf32>
    %c0_3 = arith.constant 0 : index
    %c0_4 = arith.constant 0 : index
    %4 = vector.load %arg3[%c0_3, %c0_4] : memref<8x256xf32, #tpu.memory_space<vmem>>, vector<8x256xf32>
    tpu.vector_store %arg3[%c0_3, %c0_4], %3 {strides = array<i32>} : memref<8x256xf32, #tpu.memory_space<vmem>>, vector<8x256xf32>,
    return
  }
  func.func @transform_0(%arg0: i32) -> (i32, i32) {
    %c0_i32 = arith.constant 0 : i32
    %c0_i32_0 = arith.constant 0 : i32
    return %arg0, %c0_i32 : i32, i32
  }
  func.func @transform_1(%arg0: i32) -> (i32, i32) {
    %c0_i32 = arith.constant 0 : i32
    %c0_i32_0 = arith.constant 0 : i32
    %c0_i32_1 = arith.constant 0 : i32
    return %c0_i32, %c0_i32_0 : i32, i32
  }
  func.func @transform_2(%arg0: i32) -> (i32, i32) {
    %c0_i32 = arith.constant 0 : i32
    %c0_i32_0 = arith.constant 0 : i32
    return %arg0, %c0_i32 : i32, i32
  }
}

</mosaic_0001>

<bundles_post_ra>
// kernel: tpu_custom_call.1
= control target key start
LH: loop header
LB: loop body
LE: loop exit
PB: predicated region body
PF: predicated region fallthrough
CT: control target
= control target key end

     0   :  { %7 = vsyncpa [#allocation3], 0  ;;  %s129_s0 = inlined_call_operand.hbm [shape: f32[8,256], index: 0, kind: input, shape index: {}, may-alias: {0,2}]   ;;  %s130_s1 = inlined_call_operand.vmem [shape: f32[1,256], index: 1, kind: input, shape index: {}]   ;;  %s131_s2 = inlined_call_operand.hbm [shape: f32[8,256], index: 2, kind: output, shape index: {}, may-alias: {0,2}]  }
   0x1   :  { %8 = vsyncpa [#allocation4], 0  ;;  %s103_s9 = smov [#allocation2]  }
   0x2   :  { %s15_s10 = sshll.u32 %s103_s9, 4  ;;  %s16_s10 = int_to_ptr.vmem [resolvable:$true] %s15_s10 }
   0x3   :  { %s67_s11 = scalar_lea.vmem %s16_s10, 256  ;;  %p72_p1 = scmp.lt.s32.totalorder %s16_s10, %s16_s10 }
   0x4   :  { %p68_p0 = scmp.ne.s32.totalorder %s16_s10, %s67_s11  ;;  %p73_p2 = scmp.lt.s32.totalorder %s67_s11, %s67_s11 }
   0x6   :  { %p74_p3 = por %p73_p2, %p72_p1 }
   0x8   :  { %p75_p4 = pnand %p74_p3, %p68_p0 }
   0xa   :  { %78 = shalt.err (!%p75_p4)
}
   0xb   :  { %18 = dma.hbm_to_vmem [thread:$0]  %s129_s0, 256, %s16_s10, [#allocation3]  }
   0xc   :  { %99 = dma.done.wait [#allocation3], 256  }
   0xd   :  { %100 = vsyncadd [#allocation3], 4294967040  ;;  %v28_v0 = vlaneseq  ;;  %v24_v4 = vld [vmem:[#allocation2] sm:$0xff]  ;;  %v25_v6 = vld [vmem:[#allocation2 + $0x8] sm:$0xff]  ;;  %s104_s16 = smov [#allocation5]  }
   0xe   :  { %v26_v5 = vld [vmem:[%s130_s1] sm:$0x3]  ;;  %s48_s17 = sshll.u32 %s104_s16, 4  ;;  %s49_s17 = int_to_ptr.vmem [resolvable:$true] %s48_s17 }
   0xf   :  { %v29_v1 = vshrl.u32 %v28_v0, 7  ;;  %s79_s0 = scalar_lea.vmem %s49_s17, 256  ;;  %p84_p6 = scmp.lt.s32.totalorder %s49_s17, %s49_s17 }
  0x10   :  { %p80_p5 = scmp.ne.s32.totalorder %s49_s17, %s79_s0  ;;  %p85_p7 = scmp.lt.s32.totalorder %s79_s0, %s79_s0 }
  0x11   :  { %v30_v2 = vsub.s32 0, %v29_v1  ;;  %v34_v3 = vsub.s32 1, %v29_v1 }
  0x12   :  { %p86_p8 = por %p85_p7, %p84_p6 }
  0x13   :  { %v31_v7 = vrot.slane %v26_v5, %v30_v2  ;;  %v35_v8 = vrot.slane %v26_v5, %v34_v3 }
  0x14   :  { %p87_p9 = pnand %p86_p8, %p80_p5 }
  0x15   :  { %v38_v9 = vadd.f32 %v31_v7, %v24_v4  ;;  %v39_v10 = vadd.f32 %v35_v8, %v25_v6 }
  0x17   :  { %40 = vst [vmem:[#allocation5] sm:$0xff] %v38_v9  ;;  %41 = vst [vmem:[#allocation5 + $0x8] sm:$0xff] %v39_v10 }
  0x18   :  { %90 = shalt.err (!%p87_p9)
}
  0x19   :  { %51 = dma.vmem_to_hbm [thread:$0]  %s49_s17, 256, %s131_s2, [#allocation4]  }
  0x1a   :  { %101 = dma.done.wait [#allocation4], 256  }
  0x1b   :  { %102 = vsyncadd [#allocation4], 4294967040 }
  0x1c   :  { %55 = vsyncpa [#allocation3], 1 }
  0x1d   :  { %56 = vsyncpa [#allocation4], 1 }

</bundles_post_ra>
